<compile_context>
chip_gen: v7x
topology: tpu7x:2x2x1
jax: 0.10.0
libtpu: 0.0.40
codegen_flags: <defaults>
</compile_context>

<pallas_src>
import functools

import jax
import jax.numpy as jnp
from jax.experimental import pallas as pl
from jax.experimental.pallas import tpu as pltpu


def _joints_mse_kernel(*refs, tr, tpc, hw, rows_in_last_tile, scale,
                       use_weight, ragged, acc_rows):
    # refs (weighted):   pred_ref, gt_ref, w2_ref, out_ref, acc_ref
    # refs (unweighted): pred_ref, gt_ref,         out_ref, acc_ref
    if use_weight:
        pred_ref, gt_ref, w2_ref, out_ref, acc_ref = refs
    else:
        pred_ref, gt_ref, out_ref, acc_ref = refs

    c = pl.program_id(0)   # core / row-half axis ("parallel")
    i = pl.program_id(1)   # row-tile axis within a core ("arbitrary", reduction)

    @pl.when(i == 0)
    def _init():
        acc_ref[...] = jnp.zeros_like(acc_ref)

    # Pure VPU elementwise work per step (cast is free; math done in f32).
    diff = pred_ref[...].astype(jnp.float32) - gt_ref[...].astype(jnp.float32)
    sq = diff * diff                                        # (tr, hw)

    if use_weight:
        row_start = (c * tpc + i) * tr
        if tr % 8 == 0:
            row_start = pl.multiple_of(row_start, 8)
        w2 = w2_ref[pl.ds(row_start, tr), :]                # (tr, 1), VMEM-resident
        sq = sq * w2

    def _accumulate(vals):
        if acc_rows == 8:
            # VALU add-tree across vregs; keeps the accumulator tiny.
            part = vals.reshape(tr // 8, 8, hw).sum(axis=0)   # (8, hw)
        else:
            part = jnp.sum(vals, axis=0, keepdims=True)       # (1, hw)
        acc_ref[...] += part

    if ragged:
        is_last = jnp.logical_and(c == pl.num_programs(0) - 1,
                                  i == pl.num_programs(1) - 1)

        @pl.when(is_last)
        def _masked():
            local = jax.lax.broadcasted_iota(jnp.int32, (tr, 1), 0)
            _accumulate(jnp.where(local < rows_in_last_tile, sq, 0.0))

        @pl.when(jnp.logical_not(is_last))
        def _plain():
            _accumulate(sq)
    else:
        _accumulate(sq)

    @pl.when(i == pl.num_programs(1) - 1)
    def _finalize():
        # Single cross-lane/sublane reduce per core; all constants folded.
        total = jnp.sum(acc_ref[...]) * scale
        out_ref[...] = jnp.reshape(total, (1, 1, 1))


def _plan_tiling(rows, hw, itemsize, block_bytes):
    """Returns (num_cores, tiles_per_core, tile_rows)."""
    tr_target = max(8, (block_bytes // max(1, hw * itemsize)) // 8 * 8)

    if rows <= tr_target or rows <= 8:
        return 1, 1, rows                               # single block

    # Prefer splitting the row tiles across two TensorCores (v7x win); fall back
    # to one core if that would create a fully out-of-bounds trailing tile.
    for cores in (2, 1):
        tpc = max(1, -(-rows // (cores * tr_target)))   # cdiv
        tr = ((-(-rows // (cores * tpc)) + 7) // 8) * 8
        if cores * tpc * tr - rows < tr:                # only last tile partial
            return cores, tpc, tr

    tr = tr_target                                      # always-valid fallback
    return 1, -(-rows // tr), tr


def joints_mse_loss(output, target, target_weight=None, use_target_weight=True,
                    block_bytes=4 * 1024 * 1024):
    """output, target: (B, J, H, W); target_weight: (B, J, 1). Returns scalar f32."""
    B, J, H, W = output.shape
    hw = H * W
    rows = B * J

    # Free, contiguous reshapes -- no transposes, no extra HBM traffic.
    pred = output.reshape(rows, hw)
    gt = target.reshape(rows, hw)

    itemsize = max(jnp.dtype(output.dtype).itemsize,
                   jnp.dtype(target.dtype).itemsize)
    cores, tpc, tr = _plan_tiling(rows, hw, itemsize, block_bytes)
    padded_rows = cores * tpc * tr
    ragged = padded_rows != rows
    rows_in_last_tile = rows - (cores * tpc - 1) * tr
    acc_rows = 8 if (tr % 8 == 0 and tr >= 8) else 1
    scale = 0.5 / float(J * B * hw)     # folds 0.5, 1/mean-count and 1/J

    kernel = functools.partial(
        _joints_mse_kernel,
        tr=tr, tpc=tpc, hw=hw, rows_in_last_tile=rows_in_last_tile,
        scale=scale, use_weight=use_target_weight, ragged=ragged,
        acc_rows=acc_rows,
    )

    def hm_map(c, i):
        return (c * tpc + i, 0)

    in_specs = [pl.BlockSpec((tr, hw), hm_map),
                pl.BlockSpec((tr, hw), hm_map)]
    args = [pred, gt]

    if use_target_weight:
        # Precompute w^2 (rows floats, negligible) and keep it fully VMEM
        # resident (constant index_map).  Zero-pad to the tiled extent so the
        # in-kernel dynamic slice never goes out of bounds.
        w2 = jnp.square(target_weight.reshape(rows, 1).astype(jnp.float32))
        if padded_rows != rows:
            w2 = jnp.pad(w2, ((0, padded_rows - rows), (0, 0)))
        in_specs.append(pl.BlockSpec((padded_rows, 1), lambda c, i: (0, 0)))
        args.append(w2)

    # Explicit VMEM budget: double-buffered streamed inputs + resident w^2 +
    # the small accumulator, plus headroom.  (~20 MiB at 4 MiB tiles -- within
    # every generation's limits, above v5e's 16 MiB scoped default.)
    need = 2 * tr * hw * (jnp.dtype(output.dtype).itemsize +
                          jnp.dtype(target.dtype).itemsize)
    if use_target_weight:
        need += ((padded_rows + 7) // 8) * 8 * 128 * 4
    need += 8 * hw * 4
    vmem_limit = int(need + (4 << 20))

    out = pl.pallas_call(
        kernel,
        out_shape=jax.ShapeDtypeStruct((cores, 1, 1), jnp.float32),
        grid=(cores, tpc),
        in_specs=in_specs,
        out_specs=pl.BlockSpec((1, 1, 1), lambda c, i: (c, 0, 0)),
        scratch_shapes=[pltpu.VMEM((acc_rows, hw), jnp.float32)],
        compiler_params=pltpu.CompilerParams(
            dimension_semantics=("parallel", "arbitrary"),
            vmem_limit_bytes=vmem_limit,
        ),
    )(*args)
    return jnp.sum(out)   # sum the per-core partials (already scaled)


def _reference(output, target, target_weight, use_target_weight=True):
    B, J, H, W = output.shape
    pred = output.reshape(B, J, -1).astype(jnp.float32)
    gt = target.reshape(B, J, -1).astype(jnp.float32)
    loss = 0.0
    for idx in range(J):
        p = pred[:, idx]
        g = gt[:, idx]
        if use_target_weight:
            w = target_weight[:, idx].astype(jnp.float32)   # (B, 1)
            p = p * w
            g = g * w
        loss = loss + 0.5 * jnp.mean((p - g) ** 2)
    return loss / J


if __name__ == "__main__":
    key = jax.random.PRNGKey(0)
    k1, k2, k3 = jax.random.split(key, 3)

    # Small shapes consistent with the module: batch=2, joints=4, 16x16 heatmaps.
    B, J, H, W = 2, 4, 16, 16
    output = jax.random.normal(k1, (B, J, H, W), dtype=jnp.float32)
    target = jax.random.normal(k2, (B, J, H, W), dtype=jnp.float32)
    target_weight = jax.random.uniform(k3, (B, J, 1), dtype=jnp.float32)

    # Weighted path.
    loss = jax.block_until_ready(
        joints_mse_loss(output, target, target_weight, use_target_weight=True))
    ref = _reference(output, target, target_weight, True)
    assert jnp.allclose(loss, ref, rtol=1e-5, atol=1e-6), (loss, ref)

    # Unweighted path (specialized: no weight input at all).
    loss_nw = jax.block_until_ready(
        joints_mse_loss(output, target, use_target_weight=False))
    ref_nw = _reference(output, target, target_weight, False)
    assert jnp.allclose(loss_nw, ref_nw, rtol=1e-5, atol=1e-6), (loss_nw, ref_nw)

    # Exercise the multi-tile / two-core split / ragged-last-tile paths with
    # deliberately tiny tiles (same code path large inputs take at 4 MiB tiles).
    B2, J2 = 4, 15                       # rows = 60 -> grid (2, 4), tr = 8, ragged
    o2 = jax.random.normal(k1, (B2, J2, H, W), dtype=jnp.float32)
    t2 = jax.random.normal(k2, (B2, J2, H, W), dtype=jnp.float32)
    w2 = jax.random.uniform(k3, (B2, J2, 1), dtype=jnp.float32)

    loss2 = jax.block_until_ready(
        joints_mse_loss(o2, t2, w2, use_target_weight=True, block_bytes=8 * 1024))
    ref2 = _reference(o2, t2, w2, True)
    assert jnp.allclose(loss2, ref2, rtol=1e-5, atol=1e-6), (loss2, ref2)

    loss2_nw = jax.block_until_ready(
        joints_mse_loss(o2, t2, use_target_weight=False, block_bytes=8 * 1024))
    ref2_nw = _reference(o2, t2, w2, False)
    assert jnp.allclose(loss2_nw, ref2_nw, rtol=1e-5, atol=1e-6), (loss2_nw, ref2_nw)

    print("KERNEL_OK")
</pallas_src>

<mosaic_0001>
module attributes {stable_mosaic.version = 11 : i64} {
  func.func @_joints_mse_kernel(%arg0: i32, %arg1: i32, %arg2: memref<8x256xf32, #tpu.memory_space<vmem>>, %arg3: memref<8x256xf32, #tpu.memory_space<vmem>>, %arg4: memref<8x1xf32, #tpu.memory_space<vmem>>, %arg5: memref<1x1x1xf32, #tpu.memory_space<vmem>>, %arg6: memref<8x256xf32, #tpu.memory_space<vmem>>) attributes {dimension_semantics = [#tpu.dimension_semantics<parallel>, #tpu.dimension_semantics<arbitrary>], iteration_bounds = array<i64: 1, 1>, scalar_prefetch = 0 : i64, scratch_operands = 1 : i64, tpu.core_type = #tpu.core_type<tc>, window_params = [{transform_indices = @transform_0, window_bounds = array<i64: 8, 256>}, {transform_indices = @transform_1, window_bounds = array<i64: 8, 256>}, {pipeline_mode = #tpu.pipeline_mode<synchronous>, transform_indices = @transform_2, window_bounds = array<i64: 8, 1>}, {transform_indices = @transform_3, window_bounds = array<i64: 1, 1, 1>}]} {
    %c0_i32 = arith.constant 0 : i32
    %0 = arith.cmpi eq, %arg1, %c0_i32 : i32
    %1 = arith.extui %0 : i1 to i32
    %c0_i32_0 = arith.constant 0 : i32
    %2 = arith.cmpi ne, %1, %c0_i32_0 : i32
    scf.if %2 {
      %cst_11 = arith.constant 0.000000e+00 : f32
      %23 = vector.broadcast %cst_11 : f32 to vector<8x256xf32>
      %c0_12 = arith.constant 0 : index
      %c0_13 = arith.constant 0 : index
      %24 = vector.load %arg6[%c0_12, %c0_13] : memref<8x256xf32, #tpu.memory_space<vmem>>, vector<8x256xf32>
      tpu.vector_store %arg6[%c0_12, %c0_13], %23 {strides = array<i32>} : memref<8x256xf32, #tpu.memory_space<vmem>>, vector<8x256xf32>,
    } else {
    }
    %c0 = arith.constant 0 : index
    %c0_1 = arith.constant 0 : index
    %3 = vector.load %arg2[%c0, %c0_1] : memref<8x256xf32, #tpu.memory_space<vmem>>, vector<8x256xf32>
    %c0_2 = arith.constant 0 : index
    %c0_3 = arith.constant 0 : index
    %4 = vector.load %arg3[%c0_2, %c0_3] : memref<8x256xf32, #tpu.memory_space<vmem>>, vector<8x256xf32>
    %5 = arith.subf %3, %4 : vector<8x256xf32>
    %6 = arith.mulf %5, %5 : vector<8x256xf32>
    %c1_i32 = arith.constant 1 : i32
    %7 = arith.muli %arg0, %c1_i32 : i32
    %8 = arith.addi %7, %arg1 : i32
    %c8_i32 = arith.constant 8 : i32
    %9 = arith.muli %8, %c8_i32 : i32
    %10 = tpu.assume_multiple %9, 8 : i32
    %11 = arith.index_cast %10 : i32 to index
    %c0_4 = arith.constant 0 : index
    %12 = vector.load %arg4[%11, %c0_4] : memref<8x1xf32, #tpu.memory_space<vmem>>, vector<8x1xf32>
    %13 = vector.broadcast %12 : vector<8x1xf32> to vector<8x256xf32>
    %14 = arith.mulf %6, %13 : vector<8x256xf32>
    %15 = vector.shape_cast %14 : vector<8x256xf32> to vector<1x8x256xf32>
    %cst = arith.constant dense<0.000000e+00> : vector<8x256xf32>
    %16 = vector.multi_reduction <add>, %15, %cst [0] : vector<1x8x256xf32> to vector<8x256xf32>
    %c0_5 = arith.constant 0 : index
    %c0_6 = arith.constant 0 : index
    %17 = vector.load %arg6[%c0_5, %c0_6] : memref<8x256xf32, #tpu.memory_space<vmem>>, vector<8x256xf32>
    %18 = arith.addf %17, %16 : vector<8x256xf32>
    %c0_7 = arith.constant 0 : index
    %c0_8 = arith.constant 0 : index
    %19 = vector.load %arg6[%c0_7, %c0_8] : memref<8x256xf32, #tpu.memory_space<vmem>>, vector<8x256xf32>
    tpu.vector_store %arg6[%c0_7, %c0_8], %18 {strides = array<i32>} : memref<8x256xf32, #tpu.memory_space<vmem>>, vector<8x256xf32>,
    %c0_i32_9 = arith.constant 0 : i32
    %20 = arith.cmpi eq, %arg1, %c0_i32_9 : i32
    %21 = arith.extui %20 : i1 to i32
    %c0_i32_10 = arith.constant 0 : i32
    %22 = arith.cmpi ne, %21, %c0_i32_10 : i32
    scf.if %22 {
      %c0_11 = arith.constant 0 : index
      %c0_12 = arith.constant 0 : index
      %23 = vector.load %arg6[%c0_11, %c0_12] : memref<8x256xf32, #tpu.memory_space<vmem>>, vector<8x256xf32>
      %24 = vector.shape_cast %23 : vector<8x256xf32> to vector<1x8x256xf32>
      %cst_13 = arith.constant dense<0.000000e+00> : vector<1xf32>
      %25 = vector.multi_reduction <add>, %24, %cst_13 [1, 2] : vector<1x8x256xf32> to vector<1xf32>
      %26 = vector.shape_cast %25 : vector<1xf32> to vector<1x1x1xf32>
      %27 = vector.extract %26[0, 0, 0] : f32 from vector<1x1x1xf32>
      %cst_14 = arith.constant 2.44140625E-4 : f32
      %28 = arith.mulf %27, %cst_14 : f32
      %29 = vector.broadcast %28 : f32 to vector<1x1x1xf32>
      %c0_15 = arith.constant 0 : index
      %c0_16 = arith.constant 0 : index
      %c0_17 = arith.constant 0 : index
      %30 = vector.load %arg5[%c0_15, %c0_16, %c0_17] : memref<1x1x1xf32, #tpu.memory_space<vmem>>, vector<1x1x1xf32>
      tpu.vector_store %arg5[%c0_15, %c0_16, %c0_17], %29 {strides = array<i32>} : memref<1x1x1xf32, #tpu.memory_space<vmem>>, vector<1x1x1xf32>,
    } else {
    }
    return
  }
  func.func @transform_0(%arg0: i32, %arg1: i32) -> (i32, i32) {
    %c1_i32 = arith.constant 1 : i32
    %0 = arith.muli %arg0, %c1_i32 : i32
    %1 = arith.addi %0, %arg1 : i32
    %c0_i32 = arith.constant 0 : i32
    %c0_i32_0 = arith.constant 0 : i32
    return %1, %c0_i32 : i32, i32
  }
  func.func @transform_1(%arg0: i32, %arg1: i32) -> (i32, i32) {
    %c1_i32 = arith.constant 1 : i32
    %0 = arith.muli %arg0, %c1_i32 : i32
    %1 = arith.addi %0, %arg1 : i32
    %c0_i32 = arith.constant 0 : i32
    %c0_i32_0 = arith.constant 0 : i32
    return %1, %c0_i32 : i32, i32
  }
  func.func @transform_2(%arg0: i32, %arg1: i32) -> (i32, i32) {
    %c0_i32 = arith.constant 0 : i32
    %c0_i32_0 = arith.constant 0 : i32
    %c0_i32_1 = arith.constant 0 : i32
    return %c0_i32, %c0_i32_0 : i32, i32
  }
  func.func @transform_3(%arg0: i32, %arg1: i32) -> (i32, i32, i32) {
    %c0_i32 = arith.constant 0 : i32
    %c0_i32_0 = arith.constant 0 : i32
    %c0_i32_1 = arith.constant 0 : i32
    return %arg0, %c0_i32, %c0_i32_0 : i32, i32, i32
  }
}

</mosaic_0001>

<bundles_post_ra>
// kernel: tpu_custom_call.1
= control target key start
LH: loop header
LB: loop body
LE: loop exit
PB: predicated region body
PF: predicated region fallthrough
CT: control target
= control target key end

     0   :  { %8 = vsyncpa [#allocation4], 0  ;;  %s259_s0 = inlined_call_operand.hbm [shape: f32[8,256], index: 0, kind: input, shape index: {}]   ;;  %s260_s1 = inlined_call_operand.hbm [shape: f32[8,256], index: 1, kind: input, shape index: {}]   ;;  %s261_s2 = inlined_call_operand.vmem [shape: f32[8,1], index: 2, kind: input, shape index: {}]   ;;  %s262_s3 = inlined_call_operand.hbm [shape: f32[1,1,1], index: 3, kind: output, shape index: {}]  }
   0x1   :  { %9 = vsyncpa [#allocation7], 0 }
   0x2   :  { %10 = vsyncpa [#allocation5], 0  ;;  %s196_s12 = smov [#allocation3]   ;;  %s197_s14 = smov [#allocation6]  }
   0x3   :  { %s21_s13 = sshll.u32 %s196_s12, 4  ;;  %s35_s15 = sshll.u32 %s197_s14, 4  ;;  %s22_s13 = int_to_ptr.vmem [resolvable:$true] %s21_s13  ;;  %s36_s15 = int_to_ptr.vmem [resolvable:$true] %s35_s15 }
   0x4   :  { %s124_s18 = scalar_lea.hbm %s259_s0, 256 }
   0x5   :  { %p125_p0 = scmp.ne.s32.totalorder %s259_s0, %s124_s18  ;;  %p128_p1 = scmp.lt.u32.totalorder %s124_s18, %s259_s0 }
   0x7   :  { %p130_p2 = pnand %p128_p1, %p125_p0 }
   0x9   :  { %133 = shalt.err (!%p130_p2)
}
   0xa   :  { %s134_s23 = scalar_lea.vmem %s22_s13, 256  ;;  %p139_p4 = scmp.lt.s32.totalorder %s22_s13, %s22_s13 }
   0xb   :  { %p135_p3 = scmp.ne.s32.totalorder %s22_s13, %s134_s23  ;;  %p140_p5 = scmp.lt.s32.totalorder %s134_s23, %s134_s23 }
   0xd   :  { %p141_p6 = por %p140_p5, %p139_p4 }
   0xf   :  { %p142_p7 = pnand %p141_p6, %p135_p3 }
  0x11   :  { %145 = shalt.err (!%p142_p7)
}
  0x12   :  { %24 = dma.hbm_to_vmem [thread:$0]  %s259_s0, 256, %s22_s13, [#allocation4]  }
  0x13   :  { %s146_s28 = scalar_lea.hbm %s260_s1, 256 }
  0x14   :  { %p147_p8 = scmp.ne.s32.totalorder %s260_s1, %s146_s28  ;;  %p150_p9 = scmp.lt.u32.totalorder %s146_s28, %s260_s1 }
  0x16   :  { %p152_p10 = pnand %p150_p9, %p147_p8 }
  0x18   :  { %155 = shalt.err (!%p152_p10)
}
  0x19   :  { %s156_s6 = scalar_lea.vmem %s36_s15, 256  ;;  %p161_p12 = scmp.lt.s32.totalorder %s36_s15, %s36_s15 }
  0x1a   :  { %p157_p11 = scmp.ne.s32.totalorder %s36_s15, %s156_s6  ;;  %p162_p13 = scmp.lt.s32.totalorder %s156_s6, %s156_s6 }
  0x1c   :  { %p163_p0 = por %p162_p13, %p161_p12 }
  0x1e   :  { %p164_p1 = pnand %p163_p0, %p157_p11 }
  0x20   :  { %167 = shalt.err (!%p164_p1)
}
  0x21   :  { %38 = dma.hbm_to_vmem [thread:$0]  %s260_s1, 256, %s36_s15, [#allocation7]  }
  0x22   :  { %190 = dma.done.wait [#allocation4], 256  }
  0x23   :  { %191 = vsyncadd [#allocation4], 4294967040 }
  0x24   :  { %192 = dma.done.wait [#allocation7], 256  }
  0x25   :  { %193 = vsyncadd [#allocation7], 4294967040  ;;  %v198_v0 = vmov 0   ;;  %v66_v1 = vld [vmem:[%s261_s2] sm:$0xff]  ;;  %v56_v3 = vld [vmem:[#allocation3 + $0x8] sm:$0xff]  ;;  %s199_s1 = smov [#allocation8]  }
  0x26   :  { %123 = vset.pattern.permute.xlu0 %v198_v0  ;;  %v55_v2 = vld [vmem:[#allocation3] sm:$0xff]  ;;  %v57_v4 = vld [vmem:[#allocation6] sm:$0xff]  ;;  %v58_v5 = vld [vmem:[#allocation6 + $0x8] sm:$0xff]  ;;  %s107_s2 = sshll.u32 %s199_s1, 4  ;;  %vm99_vm0 = vcmask 0   ;;  %s108_s2 = int_to_ptr.vmem [resolvable:$true] %s107_s2 }
  0x27   :  { %69 = vperm.xlu0 %123, %v66_v1   ;;  %v59_v6 = vsub.f32 %v55_v2, %v57_v4  ;;  %v60_v7 = vsub.f32 %v56_v3, %v58_v5  ;;  %s168_s12 = scalar_lea.vmem %s108_s2, 16  ;;  %s172_s13 = scalar_lea.vmem %s108_s2, 32 }
  0x28   :  { %p169_p2 = scmp.ne.s32.totalorder %s108_s2, %s168_s12  ;;  %p173_p3 = scmp.lt.s32.totalorder %s108_s2, %s108_s2 }
  0x29   :  { %v61_v8 = vmul.f32 %v59_v6, %v59_v6  ;;  %v62_v9 = vmul.f32 %v60_v7, %v60_v7  ;;  %p174_p4 = scmp.lt.s32.totalorder %s172_s13, %s168_s12 }
  0x2b   :  { %p175_p5 = por %p174_p4, %p173_p3 }
  0x2d   :  { %p176_p6 = pnand %p175_p5, %p169_p2 }
  0xa6   :  { %v70_v10 = vpop.permute.xlu0 %69 }
  0xa7   :  { %v72_v11 = vmul.f32 %v70_v10, %v61_v8  ;;  %v73_v12 = vmul.f32 %v70_v10, %v62_v9 }
  0xa9   :  { %v87_v13 = vadd.f32 %v73_v12, %v72_v11 }
  0xab   :  { %88 = vadd.xlane.f32.xlu0 %v87_v13 }
 0x138   :  { %v89_v14 = vpop.xlane.xlu0 %88 }
 0x139   :  { %v90_v15 = vrot.slane %v89_v14, 4 }
 0x13b   :  { %v91_v16 = vadd.f32 %v90_v15, %v89_v14 }
 0x13d   :  { %v92_v17 = vrot.slane %v91_v16, 2 }
 0x13f   :  { %v93_v18 = vadd.f32 %v92_v17, %v91_v16 }
 0x141   :  { %v94_v19 = vrot.slane %v93_v18, 1 }
 0x143   :  { %v95_v20 = vadd.f32 %v94_v19, %v93_v18 }
 0x145   :  { %117 = vpush %v95_v20 }
 0x176   :  { %s118_s10 = spop %117 }
 0x177   :  { %s97_s11 = smul.f32 0.00024414063, %s118_s10 }
 0x179   :  { %v98_v21 = vstv %s97_s11 }
 0x17a   :  { %100 = vst.msk [vmem:[#allocation8] sm:$0x1] %vm99_vm0, %v98_v21 }
 0x17b   :  { %179 = shalt.err (!%p176_p6)
}
 0x17c   :  { %s180_s16 = scalar_lea.hbm %s262_s3, 16 }
 0x17d   :  { %p181_p7 = scmp.ne.s32.totalorder %s262_s3, %s180_s16  ;;  %p184_p8 = scmp.lt.u32.totalorder %s180_s16, %s262_s3 }
 0x17f   :  { %p186_p9 = pnand %p184_p8, %p181_p7 }
 0x181   :  { %189 = shalt.err (!%p186_p9)
}
 0x182   :  { %110 = dma.vmem_to_hbm [thread:$0]  %s108_s2, 16, %s262_s3, [#allocation5]  }
 0x183   :  { %194 = dma.done.wait [#allocation5], 16  }
 0x184   :  { %195 = vsyncadd [#allocation5], 4294967280 }
 0x185   :  { %114 = vsyncpa [#allocation4], 1 }
 0x186   :  { %115 = vsyncpa [#allocation7], 1 }
 0x187   :  { %116 = vsyncpa [#allocation5], 1 }

</bundles_post_ra>
